<compile_context>
chip_gen: v5e
topology: v5e:2x2
jax: 0.10.0
libtpu: 0.0.40
codegen_flags: <defaults>
</compile_context>

<pallas_src>
import numpy as np
import jax
import jax.numpy as jnp
from jax import lax
from jax.experimental import pallas as pl
from jax.experimental.pallas import tpu as pltpu

KSIZE = 3          # kernel_size (default ConvSC)
GROUPS = 2         # GroupNorm groups
GN_EPS = 1e-5      # GroupNorm eps (PyTorch default)

# On v6e/v7x (mem-bound at these channel counts) this can be set to
# jnp.bfloat16 to halve MXU-operand bytes; kept f32 here for bit-faithful
# parity with the PyTorch f32 module.
MXU_DTYPE = jnp.float32


def _make_convsc_kernel(H, W, Cin, Cout, mxu_dtype):
    """Build the kernel closure with static spatial sizes."""
    HW = H * W
    cg = Cout // GROUPS

    def kernel(x_ref, w_ref, b_ref, gamma_ref, beta_ref, o_ref):
        # x_ref:     (1, Cin, HW)   NCHW input with spatial flattened on lanes
        # w_ref:     (Cout, 9*Cin)  conv weight, cols ordered (ky, kx, c_in)
        # b_ref:     (Cout, 1)      conv bias
        # gamma_ref: (Cout, 1)      GroupNorm weight
        # beta_ref:  (Cout, 1)      GroupNorm bias
        # o_ref:     (1, Cout, HW)  output (lane-dense, HW multiple of 128)
        x = x_ref[0]  # (Cin, HW), f32

        # ---- border masks (implicit zero padding) ----
        p = lax.broadcasted_iota(jnp.int32, (1, HW), 1)
        col = p % W
        row_top = p >= W               # valid when reading row y-1 (ky == 0)
        row_bot = p < (H - 1) * W      # valid when reading row y+1 (ky == 2)
        col_l = col > 0                # valid when reading col x-1 (kx == 0)
        col_r = col < (W - 1)          # valid when reading col x+1 (kx == 2)

        # ---- build im2col patches with XLU rolls + masks ----
        blocks = []
        for ky in range(KSIZE):
            for kx in range(KSIZE):
                s = (ky - 1) * W + (kx - 1)   # flat shift of this tap
                if s == 0:
                    shifted = x
                else:
                    shifted = pltpu.roll(x, shift=(-s) % HW, axis=1)
                mask = None
                if ky == 0:
                    mask = row_top
                elif ky == KSIZE - 1:
                    mask = row_bot
                if kx == 0:
                    mask = col_l if mask is None else jnp.logical_and(mask, col_l)
                elif kx == KSIZE - 1:
                    mask = col_r if mask is None else jnp.logical_and(mask, col_r)
                if mask is not None:
                    shifted = jnp.where(mask, shifted, 0.0)
                blocks.append(shifted)
        patches = jnp.concatenate(blocks, axis=0)          # (9*Cin, HW)

        # ---- single MXU matmul: (Cout, 9*Cin) @ (9*Cin, HW) ----
        y = jnp.dot(w_ref[...].astype(mxu_dtype),
                    patches.astype(mxu_dtype),
                    preferred_element_type=jnp.float32)     # (Cout, HW) f32
        y = y + b_ref[...]                                   # bias broadcast over lanes

        # ---- GroupNorm(2, Cout): fused one-pass stats over (cg, HW) ----
        n = float(cg * HW)
        s1 = jnp.sum(y, axis=1, keepdims=True)               # (Cout, 1) per-channel sum
        s2 = jnp.sum(y * y, axis=1, keepdims=True)           # (Cout, 1) per-channel sumsq
        g0_s1 = jnp.sum(s1[:cg])
        g1_s1 = jnp.sum(s1[cg:])
        g0_s2 = jnp.sum(s2[:cg])
        g1_s2 = jnp.sum(s2[cg:])
        m0 = g0_s1 / n
        m1 = g1_s1 / n
        v0 = g0_s2 / n - m0 * m0                              # biased variance
        v1 = g1_s2 / n - m1 * m1
        i0 = lax.rsqrt(v0 + GN_EPS)
        i1 = lax.rsqrt(v1 + GN_EPS)

        ch = lax.broadcasted_iota(jnp.int32, (Cout, 1), 0)
        in_g0 = ch < cg
        mean_pc = jnp.where(in_g0, m0, m1)                    # (Cout, 1)
        inv_pc = jnp.where(in_g0, i0, i1)                     # (Cout, 1)
        scale = gamma_ref[...] * inv_pc
        shift = beta_ref[...] - mean_pc * scale
        y = y * scale + shift                                 # per-channel affine FMA

        # ---- SiLU ----
        y = y * jax.nn.sigmoid(y)

        o_ref[0] = y.astype(o_ref.dtype)

    return kernel


def convsc_forward(x_nchw, w_oihw, bias, gamma, beta, *, mxu_dtype=MXU_DTYPE):
    """ConvSC forward.  x_nchw: (N, C_in, H, W) -> (N, C_out, H, W)."""
    N, Cin, H, W = x_nchw.shape
    Cout = w_oihw.shape[0]
    HW = H * W
    K2C = KSIZE * KSIZE * Cin

    # Free reshape (minor-dims collapse): keep NCHW, put H*W on the lane axis.
    x_flat = x_nchw.reshape(N, Cin, HW).astype(jnp.float32)

    # OIHW -> (Cout, ky, kx, ci) -> (Cout, 9*Cin); column order matches the
    # tap-major / channel-minor row order of the in-kernel patch matrix.
    w_flat = jnp.transpose(w_oihw, (0, 2, 3, 1)).reshape(Cout, K2C).astype(jnp.float32)
    b2 = bias.reshape(Cout, 1).astype(jnp.float32)
    g2 = gamma.reshape(Cout, 1).astype(jnp.float32)
    be2 = beta.reshape(Cout, 1).astype(jnp.float32)

    kernel = _make_convsc_kernel(H, W, Cin, Cout, mxu_dtype)

    out_flat = pl.pallas_call(
        kernel,
        out_shape=jax.ShapeDtypeStruct((N, Cout, HW), jnp.float32),
        grid_spec=pltpu.PrefetchScalarGridSpec(
            num_scalar_prefetch=0,
            grid=(N,),
            in_specs=[
                pl.BlockSpec((1, Cin, HW), lambda n: (n, 0, 0)),
                pl.BlockSpec((Cout, K2C), lambda n: (0, 0)),
                pl.BlockSpec((Cout, 1), lambda n: (0, 0)),
                pl.BlockSpec((Cout, 1), lambda n: (0, 0)),
                pl.BlockSpec((Cout, 1), lambda n: (0, 0)),
            ],
            out_specs=pl.BlockSpec((1, Cout, HW), lambda n: (n, 0, 0)),
        ),
        compiler_params=pltpu.CompilerParams(
            dimension_semantics=("parallel",),
            vmem_limit_bytes=32 * 1024 * 1024,
        ),
    )(x_flat, w_flat, b2, g2, be2)

    # Free reshape (minor-dim split) back to NCHW.
    return out_flat.reshape(N, Cout, H, W)


def _reference(x_nchw, w_oihw, bias, gamma, beta):
    """Pure-JAX reference (conv + GroupNorm + SiLU) for correctness check."""
    x_nhwc = jnp.transpose(x_nchw, (0, 2, 3, 1)).astype(jnp.float32)
    w_hwio = jnp.transpose(w_oihw, (2, 3, 1, 0)).astype(jnp.float32)
    y = lax.conv_general_dilated(
        x_nhwc, w_hwio, window_strides=(1, 1), padding=((1, 1), (1, 1)),
        dimension_numbers=("NHWC", "HWIO", "NHWC"))
    y = y + bias[None, None, None, :]
    N, H, W, C = y.shape
    cg = C // GROUPS
    yg = y.reshape(N, H * W, GROUPS, cg)
    mean = jnp.mean(yg, axis=(1, 3), keepdims=True)
    var = jnp.mean((yg - mean) ** 2, axis=(1, 3), keepdims=True)
    yn = ((yg - mean) / jnp.sqrt(var + GN_EPS)).reshape(N, H, W, C)
    yn = yn * gamma[None, None, None, :] + beta[None, None, None, :]
    out = yn * jax.nn.sigmoid(yn)
    return jnp.transpose(out, (0, 3, 1, 2))


if __name__ == "__main__":
    # Small, deterministic setup.
    N, C_in, C_out, H, W = 2, 4, 8, 16, 16

    key = jax.random.PRNGKey(0)
    kx, kw = jax.random.split(key)

    x = jax.random.normal(kx, (N, C_in, H, W), dtype=jnp.float32)

    # trunc_normal_(std=0.02) analogue: truncated N(0,1) to [-2,2], scaled by 0.02.
    w = 0.02 * jax.random.truncated_normal(
        kw, -2.0, 2.0, (C_out, C_in, KSIZE, KSIZE), dtype=jnp.float32)
    b = jnp.zeros((C_out,), jnp.float32)          # nn.init.constant_(bias, 0)
    gamma = jnp.ones((C_out,), jnp.float32)       # GroupNorm default affine params
    beta = jnp.zeros((C_out,), jnp.float32)

    out = convsc_forward(x, w, b, gamma, beta)
    out = jax.block_until_ready(out)

    ref = jax.block_until_ready(_reference(x, w, b, gamma, beta))
    if not np.allclose(np.asarray(out), np.asarray(ref), atol=2e-4, rtol=2e-4):
        raise AssertionError("Pallas ConvSC output mismatch vs JAX reference")

    print("KERNEL_OK")
</pallas_src>

<mosaic_0001>
module attributes {stable_mosaic.version = 11 : i64} {
  func.func @kernel(%arg0: i32, %arg1: memref<1x4x256xf32, #tpu.memory_space<vmem>>, %arg2: memref<8x36xf32, #tpu.memory_space<vmem>>, %arg3: memref<8x1xf32, #tpu.memory_space<vmem>>, %arg4: memref<8x1xf32, #tpu.memory_space<vmem>>, %arg5: memref<8x1xf32, #tpu.memory_space<vmem>>, %arg6: memref<1x8x256xf32, #tpu.memory_space<vmem>>) attributes {dimension_semantics = [#tpu.dimension_semantics<parallel>], iteration_bounds = array<i64: 2>, scalar_prefetch = 0 : i64, scratch_operands = 0 : i64, tpu.core_type = #tpu.core_type<tc>, window_params = [{transform_indices = @transform_0, window_bounds = array<i64: 1, 4, 256>}, {pipeline_mode = #tpu.pipeline_mode<synchronous>, transform_indices = @transform_1, window_bounds = array<i64: 8, 36>}, {pipeline_mode = #tpu.pipeline_mode<synchronous>, transform_indices = @transform_2, window_bounds = array<i64: 8, 1>}, {pipeline_mode = #tpu.pipeline_mode<synchronous>, transform_indices = @transform_3, window_bounds = array<i64: 8, 1>}, {pipeline_mode = #tpu.pipeline_mode<synchronous>, transform_indices = @transform_4, window_bounds = array<i64: 8, 1>}, {transform_indices = @transform_5, window_bounds = array<i64: 1, 8, 256>}]} {
    %c0 = arith.constant 0 : index
    %c0_0 = arith.constant 0 : index
    %c0_1 = arith.constant 0 : index
    %0 = vector.load %arg1[%c0, %c0_0, %c0_1] : memref<1x4x256xf32, #tpu.memory_space<vmem>>, vector<1x4x256xf32>
    %1 = vector.shape_cast %0 : vector<1x4x256xf32> to vector<4x256xf32>
    %2 = tpu.iota {dimensions = array<i32: 1>} : vector<1x256xi32>
    %c16_i32 = arith.constant 16 : i32
    %c0_i32 = arith.constant 0 : i32
    %3 = arith.cmpi eq, %c16_i32, %c0_i32 : i32
    %c1_i32 = arith.constant 1 : i32
    %4 = arith.select %3, %c1_i32, %c16_i32 : i32
    %5 = vector.broadcast %4 : i32 to vector<1x256xi32>
    %6 = arith.remsi %2, %5 : vector<1x256xi32>
    %c0_i32_2 = arith.constant 0 : i32
    %7 = vector.broadcast %c0_i32_2 : i32 to vector<1x256xi32>
    %8 = arith.cmpi ne, %6, %7 : vector<1x256xi32>
    %c0_i32_3 = arith.constant 0 : i32
    %9 = vector.broadcast %c0_i32_3 : i32 to vector<1x256xi32>
    %10 = arith.cmpi slt, %6, %9 : vector<1x256xi32>
    %c0_i32_4 = arith.constant 0 : i32
    %11 = arith.cmpi slt, %4, %c0_i32_4 : i32
    %12 = vector.broadcast %11 : i1 to vector<1x256xi1>
    %13 = vector.broadcast %12 : vector<1x256xi1> to vector<1x256xi1>
    %14 = arith.xori %10, %13 : vector<1x256xi1>
    %15 = arith.andi %14, %8 : vector<1x256xi1>
    %16 = vector.broadcast %4 : i32 to vector<1x256xi32>
    %17 = arith.addi %6, %16 : vector<1x256xi32>
    %18 = arith.select %15, %17, %6 : vector<1x256xi1>, vector<1x256xi32>
    %c16_i32_5 = arith.constant 16 : i32
    %19 = vector.broadcast %c16_i32_5 : i32 to vector<1x256xi32>
    %20 = arith.cmpi sge, %2, %19 : vector<1x256xi32>
    %c240_i32 = arith.constant 240 : i32
    %21 = vector.broadcast %c240_i32 : i32 to vector<1x256xi32>
    %22 = arith.cmpi slt, %2, %21 : vector<1x256xi32>
    %c0_i32_6 = arith.constant 0 : i32
    %23 = vector.broadcast %c0_i32_6 : i32 to vector<1x256xi32>
    %24 = arith.cmpi sgt, %18, %23 : vector<1x256xi32>
    %c15_i32 = arith.constant 15 : i32
    %25 = vector.broadcast %c15_i32 : i32 to vector<1x256xi32>
    %26 = arith.cmpi slt, %18, %25 : vector<1x256xi32>
    %c17_i32 = arith.constant 17 : i32
    %27 = tpu.dynamic_rotate %1 by %c17_i32 dim 1 : vector<4x256xf32>, i32 -> vector<4x256xf32>
    %28 = arith.andi %20, %24 : vector<1x256xi1>
    %cst = arith.constant 0.000000e+00 : f32
    %29 = vector.shape_cast %28 : vector<1x256xi1> to vector<1x256xi1>
    %30 = vector.broadcast %29 : vector<1x256xi1> to vector<4x256xi1>
    %31 = vector.broadcast %cst : f32 to vector<4x256xf32>
    %32 = arith.select %30, %27, %31 : vector<4x256xi1>, vector<4x256xf32>
    %c16_i32_7 = arith.constant 16 : i32
    %33 = tpu.dynamic_rotate %1 by %c16_i32_7 dim 1 : vector<4x256xf32>, i32 -> vector<4x256xf32>
    %cst_8 = arith.constant 0.000000e+00 : f32
    %34 = vector.shape_cast %20 : vector<1x256xi1> to vector<1x256xi1>
    %35 = vector.broadcast %34 : vector<1x256xi1> to vector<4x256xi1>
    %36 = vector.broadcast %cst_8 : f32 to vector<4x256xf32>
    %37 = arith.select %35, %33, %36 : vector<4x256xi1>, vector<4x256xf32>
    %c15_i32_9 = arith.constant 15 : i32
    %38 = tpu.dynamic_rotate %1 by %c15_i32_9 dim 1 : vector<4x256xf32>, i32 -> vector<4x256xf32>
    %39 = arith.andi %20, %26 : vector<1x256xi1>
    %cst_10 = arith.constant 0.000000e+00 : f32
    %40 = vector.shape_cast %39 : vector<1x256xi1> to vector<1x256xi1>
    %41 = vector.broadcast %40 : vector<1x256xi1> to vector<4x256xi1>
    %42 = vector.broadcast %cst_10 : f32 to vector<4x256xf32>
    %43 = arith.select %41, %38, %42 : vector<4x256xi1>, vector<4x256xf32>
    %c1_i32_11 = arith.constant 1 : i32
    %44 = tpu.dynamic_rotate %1 by %c1_i32_11 dim 1 : vector<4x256xf32>, i32 -> vector<4x256xf32>
    %cst_12 = arith.constant 0.000000e+00 : f32
    %45 = vector.shape_cast %24 : vector<1x256xi1> to vector<1x256xi1>
    %46 = vector.broadcast %45 : vector<1x256xi1> to vector<4x256xi1>
    %47 = vector.broadcast %cst_12 : f32 to vector<4x256xf32>
    %48 = arith.select %46, %44, %47 : vector<4x256xi1>, vector<4x256xf32>
    %c255_i32 = arith.constant 255 : i32
    %49 = tpu.dynamic_rotate %1 by %c255_i32 dim 1 : vector<4x256xf32>, i32 -> vector<4x256xf32>
    %cst_13 = arith.constant 0.000000e+00 : f32
    %50 = vector.shape_cast %26 : vector<1x256xi1> to vector<1x256xi1>
    %51 = vector.broadcast %50 : vector<1x256xi1> to vector<4x256xi1>
    %52 = vector.broadcast %cst_13 : f32 to vector<4x256xf32>
    %53 = arith.select %51, %49, %52 : vector<4x256xi1>, vector<4x256xf32>
    %c241_i32 = arith.constant 241 : i32
    %54 = tpu.dynamic_rotate %1 by %c241_i32 dim 1 : vector<4x256xf32>, i32 -> vector<4x256xf32>
    %55 = arith.andi %22, %24 : vector<1x256xi1>
    %cst_14 = arith.constant 0.000000e+00 : f32
    %56 = vector.shape_cast %55 : vector<1x256xi1> to vector<1x256xi1>
    %57 = vector.broadcast %56 : vector<1x256xi1> to vector<4x256xi1>
    %58 = vector.broadcast %cst_14 : f32 to vector<4x256xf32>
    %59 = arith.select %57, %54, %58 : vector<4x256xi1>, vector<4x256xf32>
    %c240_i32_15 = arith.constant 240 : i32
    %60 = tpu.dynamic_rotate %1 by %c240_i32_15 dim 1 : vector<4x256xf32>, i32 -> vector<4x256xf32>
    %cst_16 = arith.constant 0.000000e+00 : f32
    %61 = vector.shape_cast %22 : vector<1x256xi1> to vector<1x256xi1>
    %62 = vector.broadcast %61 : vector<1x256xi1> to vector<4x256xi1>
    %63 = vector.broadcast %cst_16 : f32 to vector<4x256xf32>
    %64 = arith.select %62, %60, %63 : vector<4x256xi1>, vector<4x256xf32>
    %c239_i32 = arith.constant 239 : i32
    %65 = tpu.dynamic_rotate %1 by %c239_i32 dim 1 : vector<4x256xf32>, i32 -> vector<4x256xf32>
    %66 = arith.andi %22, %26 : vector<1x256xi1>
    %cst_17 = arith.constant 0.000000e+00 : f32
    %67 = vector.shape_cast %66 : vector<1x256xi1> to vector<1x256xi1>
    %68 = vector.broadcast %67 : vector<1x256xi1> to vector<4x256xi1>
    %69 = vector.broadcast %cst_17 : f32 to vector<4x256xf32>
    %70 = arith.select %68, %65, %69 : vector<4x256xi1>, vector<4x256xf32>
    %71 = tpu.concatenate %32, %37, %43, %48, %1, %53, %59, %64, %70 in 0 : vector<4x256xf32>, vector<4x256xf32>, vector<4x256xf32>, vector<4x256xf32>, vector<4x256xf32>, vector<4x256xf32>, vector<4x256xf32>, vector<4x256xf32>, vector<4x256xf32> -> vector<36x256xf32>
    %c0_18 = arith.constant 0 : index
    %c0_19 = arith.constant 0 : index
    %72 = vector.load %arg2[%c0_18, %c0_19] : memref<8x36xf32, #tpu.memory_space<vmem>>, vector<8x36xf32>
    %cst_20 = arith.constant dense<0.000000e+00> : vector<8x256xf32>
    %73 = tpu.matmul %72, %71, %cst_20 {dimension_numbers = #tpu.dot_dimension_numbers<[1], [0], [0], [1], [0, 0, 1, 1], [], []>} : vector<8x36xf32>, vector<36x256xf32>, vector<8x256xf32> -> vector<8x256xf32>
    %c0_21 = arith.constant 0 : index
    %c0_22 = arith.constant 0 : index
    %74 = vector.load %arg3[%c0_21, %c0_22] : memref<8x1xf32, #tpu.memory_space<vmem>>, vector<8x1xf32>
    %75 = vector.broadcast %74 : vector<8x1xf32> to vector<8x256xf32>
    %76 = arith.addf %73, %75 : vector<8x256xf32>
    %cst_23 = arith.constant dense<0.000000e+00> : vector<8xf32>
    %77 = vector.multi_reduction <add>, %76, %cst_23 [1] : vector<8x256xf32> to vector<8xf32>
    %78 = vector.shape_cast %77 : vector<8xf32> to vector<8x1xf32>
    %79 = arith.mulf %76, %76 : vector<8x256xf32>
    %cst_24 = arith.constant dense<0.000000e+00> : vector<8xf32>
    %80 = vector.multi_reduction <add>, %79, %cst_24 [1] : vector<8x256xf32> to vector<8xf32>
    %81 = vector.shape_cast %80 : vector<8xf32> to vector<8x1xf32>
    %82 = vector.extract_strided_slice %78 {offsets = [0, 0], sizes = [4, 1], strides = [1, 1]} : vector<8x1xf32> to vector<4x1xf32>
    %83 = vector.shape_cast %82 : vector<4x1xf32> to vector<1x4x1xf32>
    %cst_25 = arith.constant dense<0.000000e+00> : vector<1xf32>
    %84 = vector.multi_reduction <add>, %83, %cst_25 [1, 2] : vector<1x4x1xf32> to vector<1xf32>
    %85 = vector.shape_cast %84 : vector<1xf32> to vector<1x1x1xf32>
    %86 = vector.extract %85[0, 0, 0] : f32 from vector<1x1x1xf32>
    %87 = vector.extract_strided_slice %78 {offsets = [4, 0], sizes = [4, 1], strides = [1, 1]} : vector<8x1xf32> to vector<4x1xf32>
    %88 = vector.shape_cast %87 : vector<4x1xf32> to vector<1x4x1xf32>
    %cst_26 = arith.constant dense<0.000000e+00> : vector<1xf32>
    %89 = vector.multi_reduction <add>, %88, %cst_26 [1, 2] : vector<1x4x1xf32> to vector<1xf32>
    %90 = vector.shape_cast %89 : vector<1xf32> to vector<1x1x1xf32>
    %91 = vector.extract %90[0, 0, 0] : f32 from vector<1x1x1xf32>
    %92 = vector.extract_strided_slice %81 {offsets = [0, 0], sizes = [4, 1], strides = [1, 1]} : vector<8x1xf32> to vector<4x1xf32>
    %93 = vector.shape_cast %92 : vector<4x1xf32> to vector<1x4x1xf32>
    %cst_27 = arith.constant dense<0.000000e+00> : vector<1xf32>
    %94 = vector.multi_reduction <add>, %93, %cst_27 [1, 2] : vector<1x4x1xf32> to vector<1xf32>
    %95 = vector.shape_cast %94 : vector<1xf32> to vector<1x1x1xf32>
    %96 = vector.extract %95[0, 0, 0] : f32 from vector<1x1x1xf32>
    %97 = vector.extract_strided_slice %81 {offsets = [4, 0], sizes = [4, 1], strides = [1, 1]} : vector<8x1xf32> to vector<4x1xf32>
    %98 = vector.shape_cast %97 : vector<4x1xf32> to vector<1x4x1xf32>
    %cst_28 = arith.constant dense<0.000000e+00> : vector<1xf32>
    %99 = vector.multi_reduction <add>, %98, %cst_28 [1, 2] : vector<1x4x1xf32> to vector<1xf32>
    %100 = vector.shape_cast %99 : vector<1xf32> to vector<1x1x1xf32>
    %101 = vector.extract %100[0, 0, 0] : f32 from vector<1x1x1xf32>
    %cst_29 = arith.constant 1.024000e+03 : f32
    %102 = arith.divf %86, %cst_29 : f32
    %cst_30 = arith.constant 1.024000e+03 : f32
    %103 = arith.divf %91, %cst_30 : f32
    %cst_31 = arith.constant 1.024000e+03 : f32
    %104 = arith.divf %96, %cst_31 : f32
    %105 = arith.mulf %102, %102 : f32
    %106 = arith.subf %104, %105 : f32
    %cst_32 = arith.constant 1.024000e+03 : f32
    %107 = arith.divf %101, %cst_32 : f32
    %108 = arith.mulf %103, %103 : f32
    %109 = arith.subf %107, %108 : f32
    %cst_33 = arith.constant 9.99999974E-6 : f32
    %110 = arith.addf %106, %cst_33 : f32
    %111 = math.rsqrt %110 : f32
    %cst_34 = arith.constant 9.99999974E-6 : f32
    %112 = arith.addf %109, %cst_34 : f32
    %113 = math.rsqrt %112 : f32
    %114 = tpu.iota {dimensions = array<i32: 0>} : vector<8x1xi32>
    %c4_i32 = arith.constant 4 : i32
    %115 = vector.broadcast %c4_i32 : i32 to vector<8x1xi32>
    %116 = arith.cmpi slt, %114, %115 : vector<8x1xi32>
    %117 = vector.broadcast %102 : f32 to vector<8x1xf32>
    %118 = vector.broadcast %103 : f32 to vector<8x1xf32>
    %119 = arith.select %116, %117, %118 : vector<8x1xi1>, vector<8x1xf32>
    %120 = vector.broadcast %111 : f32 to vector<8x1xf32>
    %121 = vector.broadcast %113 : f32 to vector<8x1xf32>
    %122 = arith.select %116, %120, %121 : vector<8x1xi1>, vector<8x1xf32>
    %c0_35 = arith.constant 0 : index
    %c0_36 = arith.constant 0 : index
    %123 = vector.load %arg4[%c0_35, %c0_36] : memref<8x1xf32, #tpu.memory_space<vmem>>, vector<8x1xf32>
    %124 = arith.mulf %123, %122 : vector<8x1xf32>
    %c0_37 = arith.constant 0 : index
    %c0_38 = arith.constant 0 : index
    %125 = vector.load %arg5[%c0_37, %c0_38] : memref<8x1xf32, #tpu.memory_space<vmem>>, vector<8x1xf32>
    %126 = arith.mulf %119, %124 : vector<8x1xf32>
    %127 = arith.subf %125, %126 : vector<8x1xf32>
    %128 = vector.broadcast %124 : vector<8x1xf32> to vector<8x256xf32>
    %129 = arith.mulf %76, %128 : vector<8x256xf32>
    %130 = vector.broadcast %127 : vector<8x1xf32> to vector<8x256xf32>
    %131 = arith.addf %129, %130 : vector<8x256xf32>
    %132 = arith.negf %131 : vector<8x256xf32>
    %133 = math.exp %132 : vector<8x256xf32>
    %cst_39 = arith.constant 1.000000e+00 : f32
    %134 = vector.broadcast %cst_39 : f32 to vector<8x256xf32>
    %135 = arith.addf %134, %133 : vector<8x256xf32>
    %136 = arith.divf %134, %135 : vector<8x256xf32>
    %137 = arith.mulf %131, %136 : vector<8x256xf32>
    %c0_40 = arith.constant 0 : index
    %c0_41 = arith.constant 0 : index
    %c0_42 = arith.constant 0 : index
    %138 = vector.load %arg6[%c0_40, %c0_41, %c0_42] : memref<1x8x256xf32, #tpu.memory_space<vmem>>, vector<1x8x256xf32>
    %139 = vector.shape_cast %138 : vector<1x8x256xf32> to vector<8x256xf32>
    %140 = vector.shape_cast %137 : vector<8x256xf32> to vector<1x8x256xf32>
    tpu.vector_store %arg6[%c0_40, %c0_41, %c0_42], %140 {strides = array<i32>} : memref<1x8x256xf32, #tpu.memory_space<vmem>>, vector<1x8x256xf32>,
    return
  }
  func.func @transform_0(%arg0: i32) -> (i32, i32, i32) {
    %c0_i32 = arith.constant 0 : i32
    %c0_i32_0 = arith.constant 0 : i32
    %c0_i32_1 = arith.constant 0 : i32
    return %arg0, %c0_i32, %c0_i32_0 : i32, i32, i32
  }
  func.func @transform_1(%arg0: i32) -> (i32, i32) {
    %c0_i32 = arith.constant 0 : i32
    %c0_i32_0 = arith.constant 0 : i32
    %c0_i32_1 = arith.constant 0 : i32
    return %c0_i32, %c0_i32_0 : i32, i32
  }
  func.func @transform_2(%arg0: i32) -> (i32, i32) {
    %c0_i32 = arith.constant 0 : i32
    %c0_i32_0 = arith.constant 0 : i32
    %c0_i32_1 = arith.constant 0 : i32
    return %c0_i32, %c0_i32_0 : i32, i32
  }
  func.func @transform_3(%arg0: i32) -> (i32, i32) {
    %c0_i32 = arith.constant 0 : i32
    %c0_i32_0 = arith.constant 0 : i32
    %c0_i32_1 = arith.constant 0 : i32
    return %c0_i32, %c0_i32_0 : i32, i32
  }
  func.func @transform_4(%arg0: i32) -> (i32, i32) {
    %c0_i32 = arith.constant 0 : i32
    %c0_i32_0 = arith.constant 0 : i32
    %c0_i32_1 = arith.constant 0 : i32
    return %c0_i32, %c0_i32_0 : i32, i32
  }
  func.func @transform_5(%arg0: i32) -> (i32, i32, i32) {
    %c0_i32 = arith.constant 0 : i32
    %c0_i32_0 = arith.constant 0 : i32
    %c0_i32_1 = arith.constant 0 : i32
    return %arg0, %c0_i32, %c0_i32_0 : i32, i32, i32
  }
}

</mosaic_0001>

<bundles_post_ra>
// kernel: tpu_custom_call.1
= control target key start
LH: loop header
LB: loop body
LE: loop exit
PB: predicated region body
PF: predicated region fallthrough
CT: control target
= control target key end

     0   :  { %10 = vsyncpa [#allocation3], 0  ;;  %s1238_s0 = inlined_call_operand.vmem [shape: f32[2,4,256], index: 0, kind: input, shape index: {}]   ;;  %s1239_s1 = inlined_call_operand.vmem [shape: f32[8,36], index: 1, kind: input, shape index: {}]   ;;  %s1240_s2 = inlined_call_operand.vmem [shape: f32[8,1], index: 2, kind: input, shape index: {}]   ;;  %s1241_s3 = inlined_call_operand.vmem [shape: f32[8,1], index: 3, kind: input, shape index: {}]   ;;  %s1242_s4 = inlined_call_operand.vmem [shape: f32[8,1], index: 4, kind: input, shape index: {}]   ;;  %s1243_s5 = inlined_call_operand.hbm [shape: f32[2,8,256], index: 5, kind: output, shape index: {}]  }
   0x1   :  { %12 = vsyncpa [#allocation3 + $0x1], 0  ;;  %s1013_s18 = smov 0   ;;  %s1015_s19 = smov 0  }
   0x2   :  { %s1017_s20 = smov 0   ;;  %s1019_s21 = smov 0  }
   0x3 LB: > { %s1034_s22 = sadd.s32 4294967295, %s971_s21   ;;  %s774_s23 = sadd.s32 4294967294, %s971_s21   ;;  %s971_s21 = sphi %s1019_s21, %s1265_s21   ;;  %s967_s20 = sphi %s1017_s20, %s1264_s20   ;;  %s963_s19 = sphi %s1015_s19, %s1263_s19   ;;  %s959_s18 = sphi %s1013_s18, %s1262_s18  }
   0x4   : > { %s1038_s24 = sadd.s32 1, %s971_s21   ;;  %s135_s25 = sadd.s32 1, %s967_s20 }
   0x5   : > { %s132_s26 = ssub.s32 %s971_s21, %s1038_s24  ;;  %p145_p0 = scmp.ne.s32.totalorder %s967_s20, %s963_s19 }
   0x6   : > { %p133_p1 = scmp.eq.s32.totalorder %s132_s26, 0  ;;  %p146_p2 = scmp.eq.s32.totalorder %s1034_s22, 1 }
   0x7   : > { %p151_p3 = scmp.ne.s32.totalorder %s963_s19, %s959_s18  ;;  %p152_p4 = scmp.eq.s32.totalorder %s774_s23, 1 }
   0x8   : > { %s1049_s27 = scalar_select %p133_p1, %s967_s20, %s135_s25  }
   0x9   : > { %p1051_p5 = por %p146_p2, %p145_p0  ;;  %p1055_p6 = por %p152_p4, %p151_p3 }
   0xa   : > { %p777_p7 = scmp.ge.s32.totalorder %s971_s21, 1  ;;  %p190_p8 = scmp.lt.s32.totalorder %s971_s21, 3 }
   0xc   : > { %p191_p9 = pnand %p777_p7, %p190_p8 }
   0xd   : > { %p218_p10 = scmp.lt.s32.totalorder (!%p191_p9), %s1034_s22, 1  ;;  %s973_s10 = smov (!%p191_p9), 127  }
   0xe   : > { %194 = sbr.rel (%p191_p9) target bundleno = 895 (0x37f), region = 40  ;;  %s974_s11 = smov (!%p191_p9), 1  }
   0xf   : > { %s975_s12 = smov (!%p191_p9), 113   ;;  %s976_s13 = smov (!%p191_p9), 112  }
  0x10   : > { %s977_s14 = smov (!%p191_p9), 17   ;;  %s978_s15 = smov (!%p191_p9), 111  }
  0x11   : > { %s979_s16 = smov (!%p191_p9), 15   ;;  %s980_s17 = smov (!%p191_p9), 16  }
  0x13   : > { %s219_s30 = scalar_select %p218_p10, %s1034_s22, 1  ;;  %v224_v25 = vlaneseq  ;;  %v451_v27 = vld [vmem:[%s1240_s2] sm:$0xff]  ;;  %v981_v28 = vmov 0   ;;  %vm441_vm11 = vcmask 1043456  }
  0x14   : > { %892 = vset.pattern.permute.xlu0 %v981_v28  ;;  %893 = vset.pattern.permute.xlu1 %v981_v28  ;;  %v450_v44 = vld [vmem:[%s1239_s1] sm:$0xff] }
  0x15   : > { %s792_s6 = sshll.u32 %s219_s30, 3  ;;  %v1067_v26 = vand.u32 127, %v224_v25  ;;  %894 = vset.pattern.permute.xlu2 %v981_v28 }
  0x16   : > { %s222_s9 = scalar_lea.vmem %s1238_s0, %s792_s6 }
  0x17   : > { %v223_v0 = vld [vmem:[%s222_s9] sm:$0xff]  ;;  %v226_v29 = vadd.s32 128, %v1067_v26  ;;  %v231_v32 = vand.u32 15, %v1067_v26  ;;  %vm383_vm0 = vcmp.lt.s32.totalorder %v1067_v26, 112  ;;  %vm345_vm1 = vcmp.lt.s32.totalorder %v1067_v26, 127 }
  0x18   : > { %260 = vst [vmem:[#allocation1] ss:$2 sm:$0xff] %v223_v0  ;;  %vm363_vm3 = vcmp.lt.s32.totalorder %v1067_v26, 113  ;;  %vm327_vm8 = vcmp.lt.s32.totalorder %v1067_v26, 1  ;;  %vm401_vm9 = vcmp.lt.s32.totalorder %v1067_v26, 111  ;;  %vm251_vm13 = vcmp.ge.s32.totalorder %v1067_v26, 16 }
  0x19   : > { %v238_v33 = vand.u32 15, %v226_v29  ;;  %vm254_vm2 = vcmp.lt.s32.totalorder %v226_v29, 240  ;;  %vm1077_vm4 = vcmp.lt.s32.totalorder %v231_v32, 15  ;;  %vm1091_vm7 = vcmp.gt.s32.totalorder %v231_v32, 0 }
  0x1a   : > { %vm269_vm14 = vcmp.lt.s32.totalorder %v1067_v26, 17  ;;  %vm307_vm15 = vcmp.lt.s32.totalorder %v1067_v26, 15 }
  0x1b   : > { %vm1081_vm5 = vcmp.gt.s32.totalorder %v238_v33, 0  ;;  %vm1087_vm6 = vcmp.lt.s32.totalorder %v238_v33, 15 }
  0x1c   : > { %vm1103_vm10 = vmand %vm254_vm2, %vm1081_vm5 }
  0x1d   : > { %vm1112_vm12 = vmand %vm254_vm2, %vm1087_vm6 }
  0x1f   : > { %v261_v1 = vld.sshfl [vmem:[#allocation1] sm:$0xff pattern:$0x75316420]  ;;  %v262_v2 = vld.sshfl [vmem:[#allocation1 + $0x8] sm:$0xff pattern:$0x75316420] }
  0x20   : > { %280 = vst [vmem:[#allocation1] ss:$2 sm:$0xff] %v223_v0  ;;  %v887_v18 = vpack.i.bf16 %v262_v2, %v261_v1 }
  0x27   : > { %v281_v3 = vld.sshfl [vmem:[#allocation1] sm:$0xff pattern:$0x75316420]  ;;  %v282_v4 = vld.sshfl [vmem:[#allocation1 + $0x8] sm:$0xff pattern:$0x75316420] }
  0x28   : > { %298 = vst [vmem:[#allocation1] ss:$2 sm:$0xff] %v223_v0  ;;  %v877_v23 = vpack.i.bf16 %v282_v4, %v281_v3 }
  0x2f   : > { %v299_v5 = vld.sshfl [vmem:[#allocation1] sm:$0xff pattern:$0x75316420]  ;;  %v300_v6 = vld.sshfl [vmem:[#allocation1 + $0x8] sm:$0xff pattern:$0x75316420] }
  0x30   : > { %318 = vst [vmem:[#allocation1] ss:$2 sm:$0xff] %v223_v0  ;;  %v882_v22 = vpack.i.bf16 %v300_v6, %v299_v5 }
  0x37   : > { %v319_v7 = vld.sshfl [vmem:[#allocation1] sm:$0xff pattern:$0x75316420]  ;;  %v320_v8 = vld.sshfl [vmem:[#allocation1 + $0x8] sm:$0xff pattern:$0x75316420] }
  0x38   : > { %336 = vst [vmem:[#allocation1] ss:$2 sm:$0xff] %v223_v0  ;;  %v857_v12 = vpack.i.bf16 %v320_v8, %v319_v7 }
  0x3a   : > { %858 = vrot.lane.b32.xlu2 %v857_v12, %s974_s11 }
  0x3f   : > { %v337_v9 = vld.sshfl [vmem:[#allocation1] sm:$0xff pattern:$0x75316420]  ;;  %v338_v10 = vld.sshfl [vmem:[#allocation1 + $0x8] sm:$0xff pattern:$0x75316420] }
  0x40   : > { %v862_v11 = vpack.i.bf16 %v338_v10, %v337_v9  ;;  %354 = vst [vmem:[#allocation1] ss:$2 sm:$0xff] %v223_v0 }
  0x42   : > { %863 = vrot.lane.b32.xlu1 %v862_v11, %s973_s10 }
  0x47   : > { %v355_v13 = vld.sshfl [vmem:[#allocation1] sm:$0xff pattern:$0x75316420]  ;;  %v356_v14 = vld.sshfl [vmem:[#allocation1 + $0x8] sm:$0xff pattern:$0x75316420] }
  0x48   : > { %374 = vst [vmem:[#allocation1] ss:$2 sm:$0xff] %v223_v0  ;;  %v867_v15 = vpack.i.bf16 %v356_v14, %v355_v13 }
  0x4a   : > { %868 = vrot.lane.b32.xlu2 %v867_v15, %s975_s12 }
  0x4f   : > { %v375_v16 = vld.sshfl [vmem:[#allocation1] sm:$0xff pattern:$0x75316420]  ;;  %v376_v17 = vld.sshfl [vmem:[#allocation1 + $0x8] sm:$0xff pattern:$0x75316420] }
  0x50   : > { %v872_v19 = vpack.i.bf16 %v376_v17, %v375_v16  ;;  %392 = vst [vmem:[#allocation1] ss:$2 sm:$0xff] %v223_v0 }
  0x52   : > { %873 = vrot.lane.b32.xlu0 %v872_v19, %s976_s13  ;;  %888 = vrot.lane.b32.xlu2 %v887_v18, %s977_s14 }
  0x57   : > { %v394_v20 = vld.sshfl [vmem:[#allocation1 + $0x8] sm:$0xff pattern:$0x75316420]  ;;  %v393_v21 = vld.sshfl [vmem:[#allocation1] sm:$0xff pattern:$0x75316420] }
  0x58   : > { %399 = vrot.lane.b32.xlu1 %v394_v20, %s978_s15  ;;  %424 = vst [vmem:[#allocation1] ss:$2 sm:$0xff] %v223_v0 }
  0x5a   : > { %397 = vrot.lane.b32.xlu0 %v393_v21, %s978_s15 }
  0x5f   : > { %v425_v9 = vld.sshfl [vmem:[#allocation1] sm:$0xff pattern:$0x75316420]  ;;  %v426_v10 = vld.sshfl [vmem:[#allocation1 + $0x8] sm:$0xff pattern:$0x75316420] }
  0x60   : > { %883 = vrot.lane.b32.xlu1 %v882_v22, %s979_s16 }
  0x62   : > { %878 = vrot.lane.b32.xlu0 %v877_v23, %s980_s17 }
  0x6a   : > { %454 = vperm.xlu0 %892, %v451_v27  }
  0x94   : > { %v859_v24 = vpop.permute.xlu2 %858 }
  0x95   : > { %v861_v41 = vunpack.i.h.bf16 %v859_v24  ;;  %v860_v42 = vunpack.i.l.bf16 %v859_v24 }
  0x97   : > { %v329_v0 = vsel %vm327_vm8, %v861_v41, %v860_v42  ;;  %v328_v4 = vsel %vm327_vm8, %v860_v42, %v861_v41 }
  0x98   : > { %v334_v15 = vsel %vm1091_vm7, %v329_v0, 0.0  ;;  %v335_v16 = vsel %vm1081_vm5, %v328_v4, 0.0 }
  0x99   : > { %v420_v27 = vrot.slane %v334_v15, 4  ;;  %v421_v28 = vrot.slane %v335_v16, 4 }
  0xa4   : > { %v869_v31 = vpop.permute.xlu2 %868 }
  0xa5   : > { %v871_v37 = vunpack.i.h.bf16 %v869_v31  ;;  %v870_v40 = vunpack.i.l.bf16 %v869_v31 }
  0xa7   : > { %v364_v50 = vsel %vm363_vm3, %v870_v40, %v871_v37  ;;  %v365_v54 = vsel %vm363_vm3, %v871_v37, %v870_v40  ;;  %vm457_vm3 = vcmask 293888  }
  0xa8   : > { %v372_v60 = vsel %vm1091_vm7, %v364_v50, 0.0  ;;  %v373_v3 = vsel %vm1103_vm10, %v365_v54, 0.0 }
  0xac   : > { %v889_v63 = vpop.permute.xlu2 %888 }
  0xad   : > { %v891_v11 = vunpack.i.h.bf16 %v889_v63  ;;  %v890_v12 = vunpack.i.l.bf16 %v889_v63 }
  0xaf   : > { %v270_v23 = vsel %vm269_vm14, %v890_v12, %v891_v11  ;;  %v271_v29 = vsel %vm269_vm14, %v891_v11, %v890_v12 }
  0xb0   : > { %v279_v37 = vsel %vm1081_vm5, %v270_v23, 0.0 }
  0xb4   : > { %v864_v30 = vpop.permute.xlu1 %863 }
  0xb5   : > { %v866_v34 = vunpack.i.h.bf16 %v864_v30  ;;  %v865_v35 = vunpack.i.l.bf16 %v864_v30 }
  0xb7   : > { %v346_v46 = vsel %vm345_vm1, %v865_v35, %v866_v34  ;;  %v347_v49 = vsel %vm345_vm1, %v866_v34, %v865_v35  ;;  %vm289_vm1 = vcmp.lt.s32.totalorder %v1067_v26, 16 }
  0xb8   : > { %v352_v56 = vsel %vm1077_vm4, %v346_v46, 0.0  ;;  %v353_v58 = vsel %vm1087_vm6, %v347_v49, 0.0 }
  0xb9   : > { %v431_v7 = vrot.slane %v352_v56, 4  ;;  %v432_v8 = vrot.slane %v353_v58, 4 }
  0xbb   : > { %v446_v18 = vsel %vm441_vm11, %v425_v9, %v431_v7  ;;  %v447_v19 = vsel %vm441_vm11, %v426_v10, %v432_v8 }
  0xc4   : > { %v874_v36 = vpop.permute.xlu0 %873 }
  0xc5   : > { %v876_v38 = vunpack.i.h.bf16 %v874_v36  ;;  %v875_v39 = vunpack.i.l.bf16 %v874_v36 }
  0xc7   : > { %v385_v45 = vsel %vm383_vm0, %v876_v38, %v875_v39  ;;  %v384_v51 = vsel %vm383_vm0, %v875_v39, %v876_v38  ;;  %vm1147_vm0 = vmand %vm251_vm13, %vm1077_vm4 }
  0xc8   : > { %v391_v52 = vsel %vm254_vm2, %v385_v45, 0.0  ;;  %v437_v61 = vrot.slane %v384_v51, 4  ;;  %vm1160_vm2 = vmand %vm251_vm13, %vm1091_vm7 }
  0xc9   : > { %v438_v62 = vrot.slane %v391_v52, 4  ;;  %v278_v43 = vsel %vm1160_vm2, %v271_v29, 0.0 }
  0xca   : > { %v400_v53 = vpop.permute.xlu1 %399  ;;  %v448_v13 = vsel %vm441_vm11, %v372_v60, %v437_v61 }
  0xcb   : > { %v449_v14 = vsel %vm441_vm11, %v373_v3, %v438_v62 }
  0xcc   : > { %v398_v59 = vpop.permute.xlu0 %397 }
  0xcd   : > { %v402_v1 = vsel %vm401_vm9, %v398_v59, %v400_v53  ;;  %v403_v2 = vsel %vm401_vm9, %v400_v53, %v398_v59 }
  0xce   : > { %v410_v5 = vsel %vm1077_vm4, %v402_v1, 0.0  ;;  %v411_v6 = vsel %vm1112_vm12, %v403_v2, 0.0  ;;  %vm515_vm4 = vcmask 3072   ;;  %v982_v1 = vmov 1024.0  }
  0xcf   : > { %781 = vmatpush.msk.msra.mxu0 %vm441_vm11, %v410_v5  ;;  %783 = vmatpush.msk.msra.mxu1 %vm441_vm11, %v411_v6  ;;  %895 = vrcp.f32 %v982_v1 }
  0xd1   : > { %479 = vmatpush.msra.mxu0 %v448_v13  ;;  %499 = vmatpush.msra.mxu1 %v449_v14 }
  0xd2   : > { %v884_v17 = vpop.permute.xlu1 %883 }
  0xd3   : > { %v886_v20 = vunpack.i.h.bf16 %v884_v17  ;;  %v885_v21 = vunpack.i.l.bf16 %v884_v17  ;;  %480 = vmatpush.msra.mxu0 %v446_v18  ;;  %500 = vmatpush.msra.mxu1 %v447_v19 }
  0xd4   : > { %v879_v24 = vpop.permute.xlu0 %878 }
  0xd5   : > { %v881_v30 = vunpack.i.h.bf16 %v879_v24  ;;  %v880_v31 = vunpack.i.l.bf16 %v879_v24  ;;  %v309_v32 = vsel %vm307_vm15, %v886_v20, %v885_v21  ;;  %v308_v33 = vsel %vm307_vm15, %v885_v21, %v886_v20  ;;  %v896_v4 = vpop.eup %895 }
  0xd6   : > { %v316_v35 = vsel %vm1147_vm0, %v309_v32, 0.0  ;;  %v317_v36 = vsel %vm1087_vm6, %v308_v33, 0.0  ;;  %v563_v13 = vmul.f32 1024.0, %v896_v4  ;;  %vm567_vm5 = vweird.f32 %v896_v4 }
  0xd7   : > { %v444_v38 = vsel %vm441_vm11, %v316_v35, %v420_v27  ;;  %v445_v39 = vsel %vm441_vm11, %v317_v36, %v421_v28  ;;  %v290_v40 = vsel %vm289_vm1, %v880_v31, %v881_v30  ;;  %v291_v41 = vsel %vm289_vm1, %v881_v30, %v880_v31 }
  0xd8   : > { %481 = vmatpush.msra.mxu0 %v444_v38  ;;  %501 = vmatpush.msra.mxu1 %v445_v39  ;;  %v415_v42 = vrot.slane %v290_v40, 4  ;;  %v296_v45 = vsel %vm251_vm13, %v291_v41, 0.0  ;;  %v564_v20 = vsub.f32 1.0, %v563_v13  ;;  %v629_v38 = vshrl.u32 %v224_v25, 7 }
  0xd9   : > { %v414_v46 = vrot.slane %v296_v45, 4 }
  0xda   : > { %v443_v47 = vsel %vm441_vm11, %v279_v37, %v415_v42  ;;  %v565_v31 = vmul.f32 %v896_v4, %v564_v20  ;;  %vm630_vm6 = vcmp.lt.s32.totalorder %v629_v38, 4 }
  0xdb   : > { %502 = vmatpush.msra.mxu1 %v443_v47  ;;  %v442_v48 = vsel %vm441_vm11, %v278_v43, %v414_v46 }
  0xdc   : > { %482 = vmatpush.msra.mxu0 %v442_v48  ;;  %784 = vmatmul.msk.f32.vlgmr.msra.gmra.mxu1 %vm457_vm3, %v450_v44  ;;  %v455_v49 = vpop.permute.xlu0 %454  ;;  %v566_v34 = vadd.f32 %v896_v4, %v565_v31 }
  0xdd   : > { %782 = vmatmul.msk.f32.vlgmr.msra.gmra.mxu0 %vm457_vm3, %v450_v44 }
  0xde   : > { %v568_v37 = vsel %vm567_vm5, %v896_v4, %v566_v34 }
 0x159   : > { %v504_v50 = vpop.f32.mrf.mxu1 }
 0x15a   : > { %v484_v51 = vpop.f32.mrf.mxu0  ;;  %v1181_v52 = vadd.f32 %v504_v50, %v455_v49 }
 0x15b   : > { %v1183_v26 = vadd.f32 %v484_v51, %v455_v49 }
 0x15c   : > { %v511_v53 = vmul.f32 %v1181_v52, %v1181_v52 }
 0x15d   : > { %v507_v54 = vadd.f32 %v1181_v52, %v1183_v26  ;;  %v510_v55 = vmul.f32 %v1183_v26, %v1183_v26 }
 0x15f   : > { %508 = vadd.xlane.f32.xlu1 %v507_v54  ;;  %v512_v56 = vadd.f32 %v511_v53, %v510_v55 }
 0x161   : > { %513 = vadd.xlane.f32.xlu2 %v512_v56 }
 0x1d2   : > { %v509_v57 = vpop.xlane.xlu1 %508 }
 0x1d3   : > { %v527_v58 = vrot.slane %v509_v57, 4  ;;  %v516_v59 = vsel %vm515_vm4, %v509_v57, 0.0 }
 0x1d4   : > { %v514_v60 = vpop.xlane.xlu2 %513  ;;  %517 = vadd.xlane.f32.xlu0 %v516_v59  ;;  %v637_v59 = vld [vmem:[%s1241_s3] sm:$0xff] }
 0x1d5   : > { %v539_v61 = vsel %vm515_vm4, %v514_v60, 0.0  ;;  %v529_v62 = vsel %vm515_vm4, %v527_v58, 0.0  ;;  %v550_v63 = vrot.slane %v514_v60, 4 }
 0x1d6   : > { %540 = vadd.xlane.f32.xlu1 %v539_v61  ;;  %530 = vadd.xlane.f32.xlu2 %v529_v62 }
 0x1d7   : > { %v552_v0 = vsel %vm515_vm4, %v550_v63, 0.0  ;;  %v639_v63 = vld [vmem:[%s1242_s4] sm:$0xff] }
 0x1de   : > { %553 = vadd.xlane.f32.xlu2 %v552_v0 }
 0x247   : > { %v518_v2 = vpop.xlane.xlu0 %517 }
 0x248   : > { %v519_v3 = vrot.slane %v518_v2, 4 }
 0x249   : > { %v531_v5 = vpop.xlane.xlu2 %530  ;;  %v541_v6 = vpop.xlane.xlu1 %540 }
 0x24a   : > { %v520_v7 = vadd.f32 %v519_v3, %v518_v2  ;;  %v532_v8 = vrot.slane %v531_v5, 4  ;;  %v542_v9 = vrot.slane %v541_v6, 4 }
 0x24c   : > { %v521_v10 = vrot.slane %v520_v7, 2  ;;  %v533_v11 = vadd.f32 %v532_v8, %v531_v5  ;;  %v543_v12 = vadd.f32 %v542_v9, %v541_v6 }
 0x24e   : > { %v534_v14 = vrot.slane %v533_v11, 2  ;;  %v544_v15 = vrot.slane %v543_v12, 2  ;;  %v522_v16 = vadd.f32 %v521_v10, %v520_v7 }
 0x250   : > { %v523_v17 = vrot.slane %v522_v16, 1  ;;  %v535_v18 = vadd.f32 %v534_v14, %v533_v11  ;;  %v545_v19 = vadd.f32 %v544_v15, %v543_v12 }
 0x251   : > { %v554_v21 = vpop.xlane.xlu2 %553 }
 0x252   : > { %v555_v22 = vrot.slane %v554_v21, 4  ;;  %v524_v23 = vadd.f32 %v523_v17, %v522_v16  ;;  %v536_v24 = vrot.slane %v535_v18, 1  ;;  %v546_v27 = vrot.slane %v545_v19, 1 }
 0x254   : > { %v556_v28 = vadd.f32 %v555_v22, %v554_v21  ;;  %794 = vpush %v524_v23  ;;  %v537_v29 = vadd.f32 %v536_v24, %v535_v18  ;;  %v547_v30 = vadd.f32 %v546_v27, %v545_v19 }
 0x256   : > { %v557_v32 = vrot.slane %v556_v28, 2  ;;  %796 = vpush %v537_v29 }
 0x257   : > { %798 = vpush %v547_v30 }
 0x258   : > { %v558_v33 = vadd.f32 %v557_v32, %v556_v28 }
 0x25a   : > { %v559_v35 = vrot.slane %v558_v33, 1 }
 0x25c   : > { %v560_v36 = vadd.f32 %v559_v35, %v558_v33 }
 0x25e   : > { %800 = vpush %v560_v36 }
 0x25f   : > { %802 = vpush %v568_v37 }
 0x285   : > { %s795_s6 = spop %794 }
 0x287   : > { %s797_s7 = spop %796 }
 0x288   : > { %s799_s8 = spop %798 }
 0x28f   : > { %s801_s9 = spop %800 }
 0x290   : > { %s803_s10 = spop %802 }
 0x291   : > { %s570_s11 = smul.f32 %s803_s10, %s795_s6 }
 0x292   : > { %s579_s12 = smul.f32 %s803_s10, %s797_s7 }
 0x293   : > { %s588_s13 = smul.f32 %s803_s10, %s799_s8  ;;  %v631_v39 = vstv %s570_s11  ;;  %s929_s8 = scalar_lea.hbm %s1243_s5, 32 }
 0x294   : > { %s589_s14 = smul.f32 %s570_s11, %s570_s11  ;;  %v632_v40 = vstv %s579_s12  ;;  %s215_s11 = sand.u32 1, %s963_s19  }
 0x295   : > { %v633_v41 = vsel %vm630_vm6, %v631_v39, %v632_v40  ;;  %s600_s15 = smul.f32 %s579_s12, %s579_s12  ;;  %s778_s12 = sshll.u32 %s215_s11, 4 }
 0x296   : > { %s590_s16 = ssub.f32 %s588_s13, %s589_s14  ;;  %s599_s17 = smul.f32 %s803_s10, %s801_s9 }
 0x297   : > { %s793_s13 = sshll.u32 %s1034_s22, 4  ;;  %s217_s22 = scalar_lea.vmem [#allocation2], %s778_s12 }
 0x298   : > { %s602_s23 = sadd.f32 1e-05, %s590_s16  ;;  %s710_s16 = scalar_lea.hbm %s1243_s5, %s793_s13 }
 0x299   : > { %s601_s25 = ssub.f32 %s599_s17, %s600_s15  ;;  %s712_s17 = sshll.u32 %s217_s22, 4  ;;  %s713_s17 = int_to_ptr.vmem [resolvable:$true] %s712_s17 }
 0x29a   : > { %v603_v42 = vstv %s602_s23  ;;  %s714_s23 = sshll.u32 %s710_s16, 4  ;;  %s715_s23 = int_to_ptr.hbm [resolvable:$true] %s714_s23 }
 0x29b   : > { %897 = vrsqrt.f32 %v603_v42  ;;  %s615_s26 = sadd.f32 1e-05, %s601_s25  ;;  %vm610_vm8 = vweird.f32 %v603_v42  ;;  %s699_s25 = scalar_lea.sflag [#allocation3], %s215_s11 }
 0x29d   : > { %v616_v25 = vstv %s615_s26  ;;  %s923_s26 = sshra.s32 %s715_s23, 4  ;;  %s924_s26 = int_to_ptr.hbm [resolvable:$true] %s923_s26 }
 0x29e   : > { %899 = vrsqrt.f32 %v616_v25  ;;  %vm623_vm11 = vweird.f32 %v616_v25  ;;  %p930_p0 = scmp.lt.s32.totalorder %s924_s26, %s1243_s5 }
 0x2a1   : > { %v898_v43 = vpop.eup %897 }
 0x2a2   : > { %v605_v45 = vmul.f32 %v898_v43, %v603_v42  ;;  %vm611_vm7 = vweird.f32 %v898_v43 }
 0x2a3   : > { %vm612_vm9 = vmor %vm610_vm8, %vm611_vm7 }
 0x2a4   : > { %v900_v46 = vpop.eup %899  ;;  %v606_v44 = vmul.f32 %v898_v43, %v605_v45 }
 0x2a5   : > { %v618_v47 = vmul.f32 %v900_v46, %v616_v25  ;;  %vm624_vm10 = vweird.f32 %v900_v46 }
 0x2a6   : > { %v607_v48 = vmul.f32 0.5, %v606_v44  ;;  %vm625_vm12 = vmor %vm623_vm11, %vm624_vm10 }
 0x2a7   : > { %v619_v49 = vmul.f32 %v900_v46, %v618_v47 }
 0x2a8   : > { %v608_v50 = vsub.f32 1.5, %v607_v48 }
 0x2a9   : > { %v620_v51 = vmul.f32 0.5, %v619_v49 }
 0x2aa   : > { %v609_v53 = vmul.f32 %v898_v43, %v608_v50 }
 0x2ab   : > { %v621_v54 = vsub.f32 1.5, %v620_v51 }
 0x2ac   : > { %v613_v55 = vsel %vm612_vm9, %v898_v43, %v609_v53 }
 0x2ad   : > { %804 = vpush %v613_v55  ;;  %v622_v56 = vmul.f32 %v900_v46, %v621_v54 }
 0x2af   : > { %v626_v57 = vsel %vm625_vm12, %v900_v46, %v622_v56 }
 0x2b0   : > { %806 = vpush %v626_v57 }
 0x2de   : > { %s805_s30 = spop %804 }
 0x2df   : > { %v634_v58 = vstv %s805_s30  ;;  %s925_s30 = scalar_lea.hbm %s924_s26, 16 }
 0x2e0   : > { %p926_p11 = scmp.ne.s32.totalorder %s924_s26, %s925_s30  ;;  %p931_p1 = scmp.lt.s32.totalorder %s929_s8, %s925_s30 }
 0x2e1   : > { %s807_s6 = spop %806 }
 0x2e2   : > { %v635_v60 = vstv %s807_s6  ;;  %p927_p12 = pnand %p926_p11, %p1051_p5  ;;  %p932_p2 = por %p931_p1, %p930_p0 }
 0x2e3   : > { %v636_v61 = vsel %vm630_vm6, %v634_v58, %v635_v60 }
 0x2e4   : > { %v638_v62 = vmul.f32 %v637_v59, %v636_v61  ;;  %p928_p13 = pneg %p927_p12 }
 0x2e6   : > { %v640_v0 = vmul.f32 %v638_v62, %v633_v41  ;;  %644 = vperm.xlu1 %893, %v638_v62   ;;  %p933_p3 = pnand %p932_p2, %p928_p13 }
 0x2e8   : > { %v641_v1 = vsub.f32 %v639_v63, %v640_v0 }
 0x2ea   : > { %651 = vperm.xlu2 %894, %v641_v1  }
 0x344   : > { %v652_v5 = vpop.permute.xlu2 %651 }
 0x358   : > { %v645_v2 = vpop.permute.xlu1 %644 }
 0x359   : > { %v647_v3 = vmul.f32 %v645_v2, %v1183_v26  ;;  %v648_v4 = vmul.f32 %v645_v2, %v1181_v52 }
 0x35b   : > { %v654_v6 = vadd.f32 %v652_v5, %v647_v3  ;;  %v655_v7 = vadd.f32 %v652_v5, %v648_v4 }
 0x35d   : > { %v785_v8 = vmul.f32 -1.442695, %v654_v6  ;;  %v786_v9 = vmul.f32 -1.442695, %v655_v7 }
 0x35f   : > { %901 = vpow2.f32 %v785_v8 }
 0x360   : > { %903 = vpow2.f32 %v786_v9 }
 0x365   : > { %v902_v10 = vpop.eup %901 }
 0x366   : > { %v904_v11 = vpop.eup %903  ;;  %v662_v12 = vadd.f32 1.0, %v902_v10 }
 0x367   : > { %v663_v13 = vadd.f32 1.0, %v904_v11 }
 0x368   : > { %905 = vrcp.f32 %v662_v12  ;;  %v675_v17 = vand.u32 2147483648, %v662_v12  ;;  %v673_v20 = vand.u32 2147483647, %v662_v12  ;;  %vm669_vm15 = vweird.f32 %v662_v12 }
 0x369   : > { %907 = vrcp.f32 %v663_v13  ;;  %v690_v21 = vand.u32 2147483648, %v663_v13  ;;  %v688_v23 = vand.u32 2147483647, %v663_v13  ;;  %vm684_vm1 = vweird.f32 %v663_v13 }
 0x36a   : > { %v676_v27 = vor.u32 1.1754944e-38, %v675_v17  ;;  %vm674_vm2 = vcmp.eq.f32.partialorder %v673_v20, 8.507059e+37 }
 0x36b   : > { %v691_v30 = vor.u32 1.1754944e-38, %v690_v21  ;;  %vm689_vm4 = vcmp.eq.f32.partialorder %v688_v23, 8.507059e+37 }
 0x36e   : > { %v906_v14 = vpop.eup %905 }
 0x36f   : > { %v908_v26 = vpop.eup %907  ;;  %v665_v15 = vmul.f32 %v906_v14, %v662_v12  ;;  %vm670_vm13 = vweird.f32 %v906_v14 }
 0x370   : > { %v680_v52 = vmul.f32 %v908_v26, %v663_v13  ;;  %vm685_vm14 = vweird.f32 %v908_v26  ;;  %vm671_vm0 = vmor %vm669_vm15, %vm670_vm13 }
 0x371   : > { %v666_v16 = vsub.f32 1.0, %v665_v15  ;;  %vm686_vm3 = vmor %vm684_vm1, %vm685_vm14 }
 0x372   : > { %v681_v18 = vsub.f32 1.0, %v680_v52 }
 0x373   : > { %v667_v19 = vmul.f32 %v906_v14, %v666_v16 }
 0x374   : > { %v682_v22 = vmul.f32 %v908_v26, %v681_v18 }
 0x375   : > { %v668_v24 = vadd.f32 %v906_v14, %v667_v19 }
 0x376   : > { %v683_v28 = vadd.f32 %v908_v26, %v682_v22 }
 0x377   : > { %v672_v29 = vsel %vm671_vm0, %v906_v14, %v668_v24 }
 0x378   : > { %v677_v31 = vsel %vm674_vm2, %v676_v27, %v672_v29  ;;  %v687_v32 = vsel %vm686_vm3, %v908_v26, %v683_v28 }
 0x379   : > { %v692_v33 = vsel %vm689_vm4, %v691_v30, %v687_v32  ;;  %v694_v34 = vmul.f32 %v677_v31, %v654_v6 }
 0x37a   : > { %v695_v35 = vmul.f32 %v692_v33, %v655_v7 }
 0x37b   : > { %696 = vst [vmem:[%s217_s22] sm:$0xff] %v694_v34 }
 0x37c   : > { %697 = vst [vmem:[%s217_s22 + $0x8] sm:$0xff] %v695_v35 }
 0x37d   : > { %936 = shalt.err (!%p933_p3)
}
 0x37e   : > { %808 = dma.vmem_to_hbm [thread:$0]  (%p1051_p5), %s713_s17, 256, %s715_s23, %s699_s25  }
 0x37f PF: > { %p814_p4 = scmp.ge.s32.totalorder %s971_s21, 2  ;;  %s726_s11 = sand.u32 1, %s959_s18  }
 0x380   : > { %s727_s12 = scalar_lea.sflag [#allocation3], %s726_s11 }
 0x381   : > { %p811_p7 = pnand %p814_p4, %p1055_p6 }
 0x383   : > { %p812_p8 = pneg %p811_p7 }
 0x385   : > { %954 = dma.done.wait (%p812_p8), %s727_s12, 256  }
 0x386   : > { %956 = vsyncadd (%p812_p8), %s727_s12, 4294967040  ;;  %p15_p9 = scmp.ge.s32.totalorder %s1038_s24, 4   ;;  %s1262_s18 = smov %s963_s19 }
 0x387   : > { %s1263_s19 = smov %s967_s20  ;;  %s1264_s20 = smov %s1049_s27 }
 0x388   : > { %s1265_s21 = smov %s1038_s24  ;;  %17 = sbr.rel (!%p15_p9) target bundleno = 3 (0x3), region = 75 }
 0x38d   :  { %733 = vsyncpa [#allocation3], 1 }
 0x38e   :  { %735 = vsyncpa [#allocation3 + $0x1], 1 }

</bundles_post_ra>
